<compile_context>
chip_gen: v7x
topology: tpu7x:2x2x1
jax: 0.10.0
libtpu: 0.0.40
codegen_flags: <defaults>
</compile_context>

<pallas_src>
import functools

import jax
import jax.numpy as jnp
from jax.experimental import pallas as pl
from jax.experimental.pallas import tpu as pltpu


_CHUNK = 512  # lane-chunk (multiple of 128) processed per inner-loop iteration


def _gdice_partial_kernel(x_ref, y_ref, o_ref, tp_acc, xs_acc, ys_acc, *,
                          tile_s, chunk, n_chunks, s_total, n_classes,
                          dense_gt, fuse_softmax, has_edge):
    """Accumulate per-class partial sums for one (split, batch) grid cell.

    x_ref : (C, TILE_S)  net-output tile (native dtype, cast to f32 in vregs)
    y_ref : (1, TILE_S)  integer/float label map           (dense_gt=False)
            (C, TILE_S)  dense / one-hot target            (dense_gt=True)
    o_ref : (C, 3)       per-(split,batch) output, written once at the last
                         reduction step: [:,0]=sum(x*y) [:,1]=sum(x) [:,2]=sum(y)
    *_acc : (C, CHUNK) f32 VMEM scratch lane-partial accumulators.
    """
    p = pl.program_id(0)
    k = pl.program_id(2)
    nk = pl.num_programs(2)

    @pl.when(k == 0)
    def _init():
        tp_acc[...] = jnp.zeros_like(tp_acc)
        xs_acc[...] = jnp.zeros_like(xs_acc)
        ys_acc[...] = jnp.zeros_like(ys_acc)

    # Global (unclamped) first column of this spatial tile.  The index_map
    # clamps the DMA to the last real tile, so "phantom" tiles created by the
    # spatial split re-read valid memory and are fully masked out here.
    base = (p * nk + k) * tile_s

    def process(masked):
        def chunk_body(i, carry):
            start = i * chunk
            if not isinstance(start, int):
                start = pl.multiple_of(start, chunk)
            x = x_ref[:, pl.ds(start, chunk)].astype(jnp.float32)     # (C, chunk)

            if fuse_softmax:
                # softmax over the class (sublane) axis, fused in-kernel.
                m = jnp.max(x, axis=0, keepdims=True)
                e = jnp.exp(x - m)
                x = e / jnp.sum(e, axis=0, keepdims=True)

            if masked:
                col = base + start + jax.lax.broadcasted_iota(
                    jnp.int32, (1, chunk), 1)
                valid = col < s_total                                  # (1, chunk)

            if dense_gt:
                y = y_ref[:, pl.ds(start, chunk)].astype(jnp.float32)  # (C, chunk)
                if masked:
                    x = jnp.where(valid, x, 0.0)
                    y = jnp.where(valid, y, 0.0)
                tp_acc[...] += x * y
                xs_acc[...] += x
                ys_acc[...] += y
            else:
                # Build the one-hot in-register: the f32 one-hot never touches HBM.
                lbl = y_ref[:, pl.ds(start, chunk)].astype(jnp.int32)  # (1, chunk)
                cls = jax.lax.broadcasted_iota(jnp.int32, (n_classes, chunk), 0)
                hit = cls == lbl                                       # (C, chunk)
                if masked:
                    x = jnp.where(valid, x, 0.0)
                    hit = jnp.logical_and(hit, valid)
                tp_acc[...] += jnp.where(hit, x, 0.0)   # select replaces cast+mul
                xs_acc[...] += x
                ys_acc[...] += jnp.where(hit, 1.0, 0.0)
            return carry

        if n_chunks == 1:
            chunk_body(0, 0)                      # static slice, no inner loop
        else:
            jax.lax.fori_loop(0, n_chunks, chunk_body, 0)

    if has_edge:
        # Only the ragged / phantom tiles pay for the iota + selects.
        is_edge = (base + tile_s) > s_total

        @pl.when(is_edge)
        def _masked():
            process(True)

        @pl.when(jnp.logical_not(is_edge))
        def _unmasked():
            process(False)
    else:
        process(False)

    @pl.when(k == nk - 1)
    def _finalize():
        o_ref[:, 0:1] = jnp.sum(tp_acc[...], axis=-1, keepdims=True)
        o_ref[:, 1:2] = jnp.sum(xs_acc[...], axis=-1, keepdims=True)
        o_ref[:, 2:3] = jnp.sum(ys_acc[...], axis=-1, keepdims=True)


def _vmem_capacity_bytes():
    """Generation-aware VMEM size (v7x: 64 MiB/TC, v5e/v6e: 128 MiB)."""
    try:
        cap = int(pltpu.get_tpu_info().vmem_capacity_bytes)
    except Exception:
        cap = 128 * 1024 * 1024
    return max(cap, 64 * 1024 * 1024)


def _pick_tile(s, bytes_per_col, force_tile):
    """Spatial tile width: multi-MiB DMA per grid step, bounded by VMEM."""
    if force_tile is not None:
        return int(min(int(force_tile), s))
    cap = _vmem_capacity_bytes()
    # Each step moves up to ~8 MiB of HBM-dtype input; double-buffered blocks
    # (2x) stay well under VMEM on every generation.  The in-kernel f32
    # temporaries are only (C, CHUNK)-sized (chunked inner loop), so they do
    # not scale with the tile.
    per_step_budget = min(8 * 1024 * 1024, cap // 5)
    t = per_step_budget // max(int(bytes_per_col), 1)
    t = max(_CHUNK, (t // _CHUNK) * _CHUNK)
    return int(s) if s <= t else int(t)


def gdice_loss(net_output, gt, *, apply_nonlin=None, smooth=1e-5, _force_tile=None):
    """Generalized Dice loss matching GDiceLoss.forward.

    apply_nonlin: None (default), "softmax" (fused over the class axis inside
    the kernel), or a callable (run as plain JAX in the wrapper).
    """
    x = net_output
    fuse_softmax = False
    if apply_nonlin == "softmax":
        fuse_softmax = True
    elif callable(apply_nonlin):
        # TODO(synk): arbitrary apply_nonlin callables run as plain JAX in the
        # wrapper (extra HBM pass); pass "softmax" to fuse the common case.
        x = apply_nonlin(x)

    B, C = int(x.shape[0]), int(x.shape[1])
    S = 1
    for d in x.shape[2:]:
        S *= int(d)

    # --- gt handling: mirror the module's no_grad one-hot construction -------
    y = gt
    if y.ndim != x.ndim:
        y = y.reshape((y.shape[0], 1) + tuple(y.shape[1:]))
    dense_gt = tuple(y.shape) == tuple(x.shape)

    x3 = x.reshape(B, C, S)                 # trailing-dim collapse only
    if dense_gt:
        y3 = y.reshape(B, C, S)             # dense/one-hot target streamed as-is
        y_rows = C                          # (prefer label maps: half the HBM traffic)
    else:
        y3 = y.reshape(B, 1, S)             # label map in its NATIVE dtype;
        y_rows = 1                          # cast per-tile in vregs (no extra HBM pass)

    bytes_per_col = (C * jnp.dtype(x3.dtype).itemsize
                     + y_rows * jnp.dtype(y3.dtype).itemsize)
    tile_s = _pick_tile(S, bytes_per_col, _force_tile)
    chunk = _CHUNK if (tile_s % _CHUNK == 0) else tile_s
    n_chunks = tile_s // chunk
    n_tiles = pl.cdiv(S, tile_s)

    # Split the spatial reduction across a leading parallel axis when the batch
    # alone cannot feed both v7x TensorCores (no-op on v5e/v6e: single TC).
    n_split = 2 if (B == 1 and n_tiles >= 2) else 1
    kpp = pl.cdiv(n_tiles, n_split)                # spatial tiles per split
    has_edge = (n_split * kpp * tile_s) > S        # ragged last tile / phantom tiles

    cap = _vmem_capacity_bytes()
    block_bytes = tile_s * bytes_per_col
    need = 2 * block_bytes + 3 * C * chunk * 4 + (2 << 20)
    vmem_limit = max(min(max(need, 16 << 20), int(0.55 * cap)), need)

    kernel = functools.partial(
        _gdice_partial_kernel,
        tile_s=tile_s, chunk=chunk, n_chunks=n_chunks, s_total=S,
        n_classes=C, dense_gt=dense_gt, fuse_softmax=fuse_softmax,
        has_edge=has_edge)

    last_tile = n_tiles - 1
    x_spec = pl.BlockSpec(
        (None, C, tile_s),
        lambda p, b, k, _kpp=kpp, _lt=last_tile: (b, 0, jnp.minimum(p * _kpp + k, _lt)))
    y_spec = pl.BlockSpec(
        (None, y_rows, tile_s),
        lambda p, b, k, _kpp=kpp, _lt=last_tile: (b, 0, jnp.minimum(p * _kpp + k, _lt)))
    o_spec = pl.BlockSpec((None, None, C, 3), lambda p, b, k: (p, b, 0, 0))

    sums = pl.pallas_call(
        kernel,
        out_shape=jax.ShapeDtypeStruct((n_split, B, C, 3), jnp.float32),
        grid_spec=pltpu.PrefetchScalarGridSpec(
            num_scalar_prefetch=0,
            grid=(n_split, B, kpp),
            in_specs=[x_spec, y_spec],
            out_specs=o_spec,
            scratch_shapes=[
                pltpu.VMEM((C, chunk), jnp.float32),
                pltpu.VMEM((C, chunk), jnp.float32),
                pltpu.VMEM((C, chunk), jnp.float32),
            ]),
        compiler_params=pltpu.CompilerParams(
            dimension_semantics=("parallel", "parallel", "arbitrary"),
            vmem_limit_bytes=int(vmem_limit)),
    )(x3, y3)

    # --- tiny O(C) finalize: class weights + global ratio (plain JAX) --------
    tot = jnp.sum(sums, axis=(0, 1))                 # (C, 3) over split & batch
    tp, xs, ys = tot[:, 0], tot[:, 1], tot[:, 2]
    w = 1.0 / jnp.maximum(ys * ys, smooth)           # class_weights
    intersect = jnp.sum(tp * w)
    denominator = jnp.maximum(jnp.sum((xs + ys) * w), smooth)
    return 1.0 - 2.0 * intersect / denominator


def _gdice_ref(net_output, gt, smooth=1e-5):
    """Pure-JAX reference mirroring the PyTorch GDiceLoss module."""
    x = net_output
    C = x.shape[1]
    y = gt
    if y.ndim != x.ndim:
        y = y.reshape((y.shape[0], 1) + tuple(y.shape[1:]))
    if tuple(y.shape) == tuple(x.shape):
        y_onehot = y
    else:
        y_onehot = jax.nn.one_hot(y[:, 0].astype(jnp.int32), C, axis=1, dtype=jnp.float32)
    perm = (1, 0) + tuple(range(2, x.ndim))
    inp = jnp.transpose(x, perm).reshape(C, -1)
    tgt = jnp.transpose(y_onehot, perm).reshape(C, -1).astype(jnp.float32)
    tsum = tgt.sum(-1)
    w = 1.0 / jnp.maximum(tsum * tsum, smooth)
    intersect = jnp.sum(jnp.sum(inp * tgt, axis=-1) * w)
    denominator = jnp.maximum(jnp.sum(jnp.sum(inp + tgt, axis=-1) * w), smooth)
    return 1.0 - 2.0 * intersect / denominator


if __name__ == "__main__":
    key = jax.random.PRNGKey(0)
    kx, ky, kx2, ky2 = jax.random.split(key, 4)

    # (1) label-map gt, no nonlin -- exercises the in-kernel one-hot path.
    B, C, H, W = 2, 4, 16, 16
    x = jax.random.uniform(kx, (B, C, H, W), dtype=jnp.float32)
    y = jax.random.randint(ky, (B, H, W), 0, C, dtype=jnp.int32)
    loss = jax.block_until_ready(gdice_loss(x, y))
    ref = _gdice_ref(x, y)
    assert jnp.allclose(loss, ref, rtol=1e-5, atol=1e-6), (loss, ref)

    # (2) gt already one-hot (same shape as net output) -- dense path.
    y_dense = jax.nn.one_hot(y, C, axis=1, dtype=jnp.float32)
    loss2 = jax.block_until_ready(gdice_loss(x, y_dense))
    ref2 = _gdice_ref(x, y_dense)
    assert jnp.allclose(loss2, ref2, rtol=1e-5, atol=1e-6), (loss2, ref2)

    # (3) fused softmax nonlin.
    loss3 = jax.block_until_ready(gdice_loss(x, y, apply_nonlin="softmax"))
    ref3 = _gdice_ref(jax.nn.softmax(x, axis=1), y)
    assert jnp.allclose(loss3, ref3, rtol=1e-5, atol=1e-6), (loss3, ref3)

    # (4) multi-tile + ragged last tile + B=1 spatial split, exercised with a
    #     small forced tile so the masked / phantom-tile paths get coverage.
    B2, C2, H2, W2 = 1, 3, 7, 37
    x2 = jax.random.uniform(kx2, (B2, C2, H2, W2), dtype=jnp.float32)
    y2 = jax.random.randint(ky2, (B2, H2, W2), 0, C2, dtype=jnp.int32)
    loss4 = jax.block_until_ready(
        gdice_loss(x2, y2, apply_nonlin="softmax", _force_tile=128))
    ref4 = _gdice_ref(jax.nn.softmax(x2, axis=1), y2)
    assert jnp.allclose(loss4, ref4, rtol=1e-5, atol=1e-6), (loss4, ref4)

    print("KERNEL_OK")
</pallas_src>

<mosaic_0001>
module attributes {stable_mosaic.version = 11 : i64} {
  func.func @_gdice_partial_kernel(%arg0: i32, %arg1: i32, %arg2: i32, %arg3: memref<1x4x256xf32, #tpu.memory_space<vmem>>, %arg4: memref<1x1x256xi32, #tpu.memory_space<vmem>>, %arg5: memref<1x1x4x3xf32, #tpu.memory_space<vmem>>, %arg6: memref<4x256xf32, #tpu.memory_space<vmem>>, %arg7: memref<4x256xf32, #tpu.memory_space<vmem>>, %arg8: memref<4x256xf32, #tpu.memory_space<vmem>>) attributes {dimension_semantics = [#tpu.dimension_semantics<parallel>, #tpu.dimension_semantics<parallel>, #tpu.dimension_semantics<arbitrary>], iteration_bounds = array<i64: 1, 2, 1>, scalar_prefetch = 0 : i64, scratch_operands = 3 : i64, tpu.core_type = #tpu.core_type<tc>, window_params = [{transform_indices = @transform_0, window_bounds = array<i64: 1, 4, 256>}, {transform_indices = @transform_1, window_bounds = array<i64: 1, 1, 256>}, {transform_indices = @transform_2, window_bounds = array<i64: 1, 1, 4, 3>}]} {
    %c0_i32 = arith.constant 0 : i32
    %0 = arith.cmpi eq, %arg2, %c0_i32 : i32
    %1 = arith.extui %0 : i1 to i32
    %c0_i32_0 = arith.constant 0 : i32
    %2 = arith.cmpi ne, %1, %c0_i32_0 : i32
    scf.if %2 {
      %cst_22 = arith.constant 0.000000e+00 : f32
      %27 = vector.broadcast %cst_22 : f32 to vector<4x256xf32>
      %c0_23 = arith.constant 0 : index
      %c0_24 = arith.constant 0 : index
      %28 = vector.load %arg6[%c0_23, %c0_24] : memref<4x256xf32, #tpu.memory_space<vmem>>, vector<4x256xf32>
      tpu.vector_store %arg6[%c0_23, %c0_24], %27 {strides = array<i32>} : memref<4x256xf32, #tpu.memory_space<vmem>>, vector<4x256xf32>,
      %cst_25 = arith.constant 0.000000e+00 : f32
      %29 = vector.broadcast %cst_25 : f32 to vector<4x256xf32>
      %c0_26 = arith.constant 0 : index
      %c0_27 = arith.constant 0 : index
      %30 = vector.load %arg7[%c0_26, %c0_27] : memref<4x256xf32, #tpu.memory_space<vmem>>, vector<4x256xf32>
      tpu.vector_store %arg7[%c0_26, %c0_27], %29 {strides = array<i32>} : memref<4x256xf32, #tpu.memory_space<vmem>>, vector<4x256xf32>,
      %cst_28 = arith.constant 0.000000e+00 : f32
      %31 = vector.broadcast %cst_28 : f32 to vector<4x256xf32>
      %c0_29 = arith.constant 0 : index
      %c0_30 = arith.constant 0 : index
      %32 = vector.load %arg8[%c0_29, %c0_30] : memref<4x256xf32, #tpu.memory_space<vmem>>, vector<4x256xf32>
      tpu.vector_store %arg8[%c0_29, %c0_30], %31 {strides = array<i32>} : memref<4x256xf32, #tpu.memory_space<vmem>>, vector<4x256xf32>,
    } else {
    }
    %c0 = arith.constant 0 : index
    %c0_1 = arith.constant 0 : index
    %c0_2 = arith.constant 0 : index
    %3 = vector.load %arg3[%c0, %c0_1, %c0_2] : memref<1x4x256xf32, #tpu.memory_space<vmem>>, vector<1x4x256xf32>
    %4 = vector.shape_cast %3 : vector<1x4x256xf32> to vector<4x256xf32>
    %c0_3 = arith.constant 0 : index
    %c0_4 = arith.constant 0 : index
    %c0_5 = arith.constant 0 : index
    %5 = vector.load %arg4[%c0_3, %c0_4, %c0_5] : memref<1x1x256xi32, #tpu.memory_space<vmem>>, vector<1x1x256xi32>
    %6 = vector.shape_cast %5 : vector<1x1x256xi32> to vector<1x256xi32>
    %7 = tpu.iota {dimensions = array<i32: 0>} : vector<4x256xi32>
    %8 = vector.broadcast %6 : vector<1x256xi32> to vector<4x256xi32>
    %9 = arith.cmpi eq, %7, %8 : vector<4x256xi32>
    %c0_6 = arith.constant 0 : index
    %c0_7 = arith.constant 0 : index
    %10 = vector.load %arg6[%c0_6, %c0_7] : memref<4x256xf32, #tpu.memory_space<vmem>>, vector<4x256xf32>
    %cst = arith.constant 0.000000e+00 : f32
    %11 = vector.broadcast %cst : f32 to vector<4x256xf32>
    %12 = arith.select %9, %4, %11 : vector<4x256xi1>, vector<4x256xf32>
    %13 = arith.addf %10, %12 : vector<4x256xf32>
    %c0_8 = arith.constant 0 : index
    %c0_9 = arith.constant 0 : index
    %14 = vector.load %arg6[%c0_8, %c0_9] : memref<4x256xf32, #tpu.memory_space<vmem>>, vector<4x256xf32>
    tpu.vector_store %arg6[%c0_8, %c0_9], %13 {strides = array<i32>} : memref<4x256xf32, #tpu.memory_space<vmem>>, vector<4x256xf32>,
    %c0_10 = arith.constant 0 : index
    %c0_11 = arith.constant 0 : index
    %15 = vector.load %arg7[%c0_10, %c0_11] : memref<4x256xf32, #tpu.memory_space<vmem>>, vector<4x256xf32>
    %16 = arith.addf %15, %4 : vector<4x256xf32>
    %c0_12 = arith.constant 0 : index
    %c0_13 = arith.constant 0 : index
    %17 = vector.load %arg7[%c0_12, %c0_13] : memref<4x256xf32, #tpu.memory_space<vmem>>, vector<4x256xf32>
    tpu.vector_store %arg7[%c0_12, %c0_13], %16 {strides = array<i32>} : memref<4x256xf32, #tpu.memory_space<vmem>>, vector<4x256xf32>,
    %c0_14 = arith.constant 0 : index
    %c0_15 = arith.constant 0 : index
    %18 = vector.load %arg8[%c0_14, %c0_15] : memref<4x256xf32, #tpu.memory_space<vmem>>, vector<4x256xf32>
    %cst_16 = arith.constant 1.000000e+00 : f32
    %cst_17 = arith.constant 0.000000e+00 : f32
    %19 = vector.broadcast %cst_16 : f32 to vector<4x256xf32>
    %20 = vector.broadcast %cst_17 : f32 to vector<4x256xf32>
    %21 = arith.select %9, %19, %20 : vector<4x256xi1>, vector<4x256xf32>
    %22 = arith.addf %18, %21 : vector<4x256xf32>
    %c0_18 = arith.constant 0 : index
    %c0_19 = arith.constant 0 : index
    %23 = vector.load %arg8[%c0_18, %c0_19] : memref<4x256xf32, #tpu.memory_space<vmem>>, vector<4x256xf32>
    tpu.vector_store %arg8[%c0_18, %c0_19], %22 {strides = array<i32>} : memref<4x256xf32, #tpu.memory_space<vmem>>, vector<4x256xf32>,
    %c0_i32_20 = arith.constant 0 : i32
    %24 = arith.cmpi eq, %arg2, %c0_i32_20 : i32
    %25 = arith.extui %24 : i1 to i32
    %c0_i32_21 = arith.constant 0 : i32
    %26 = arith.cmpi ne, %25, %c0_i32_21 : i32
    scf.if %26 {
      %c0_22 = arith.constant 0 : index
      %c0_23 = arith.constant 0 : index
      %27 = vector.load %arg6[%c0_22, %c0_23] : memref<4x256xf32, #tpu.memory_space<vmem>>, vector<4x256xf32>
      %cst_24 = arith.constant dense<0.000000e+00> : vector<4xf32>
      %28 = vector.multi_reduction <add>, %27, %cst_24 [1] : vector<4x256xf32> to vector<4xf32>
      %29 = vector.shape_cast %28 : vector<4xf32> to vector<4x1xf32>
      %c0_25 = arith.constant 0 : index
      %c0_26 = arith.constant 0 : index
      %c0_27 = arith.constant 0 : index
      %c0_28 = arith.constant 0 : index
      %30 = vector.load %arg5[%c0_25, %c0_26, %c0_27, %c0_28] : memref<1x1x4x3xf32, #tpu.memory_space<vmem>>, vector<1x1x4x1xf32>
      %31 = vector.shape_cast %30 : vector<1x1x4x1xf32> to vector<4x1xf32>
      %32 = vector.shape_cast %29 : vector<4x1xf32> to vector<1x1x4x1xf32>
      tpu.vector_store %arg5[%c0_25, %c0_26, %c0_27, %c0_28], %32 {strides = array<i32>} : memref<1x1x4x3xf32, #tpu.memory_space<vmem>>, vector<1x1x4x1xf32>,
      %c0_29 = arith.constant 0 : index
      %c0_30 = arith.constant 0 : index
      %33 = vector.load %arg7[%c0_29, %c0_30] : memref<4x256xf32, #tpu.memory_space<vmem>>, vector<4x256xf32>
      %cst_31 = arith.constant dense<0.000000e+00> : vector<4xf32>
      %34 = vector.multi_reduction <add>, %33, %cst_31 [1] : vector<4x256xf32> to vector<4xf32>
      %35 = vector.shape_cast %34 : vector<4xf32> to vector<4x1xf32>
      %c0_32 = arith.constant 0 : index
      %c0_33 = arith.constant 0 : index
      %c0_34 = arith.constant 0 : index
      %c1 = arith.constant 1 : index
      %36 = vector.load %arg5[%c0_32, %c0_33, %c0_34, %c1] : memref<1x1x4x3xf32, #tpu.memory_space<vmem>>, vector<1x1x4x1xf32>
      %37 = vector.shape_cast %36 : vector<1x1x4x1xf32> to vector<4x1xf32>
      %38 = vector.shape_cast %35 : vector<4x1xf32> to vector<1x1x4x1xf32>
      tpu.vector_store %arg5[%c0_32, %c0_33, %c0_34, %c1], %38 {strides = array<i32>} : memref<1x1x4x3xf32, #tpu.memory_space<vmem>>, vector<1x1x4x1xf32>,
      %c0_35 = arith.constant 0 : index
      %c0_36 = arith.constant 0 : index
      %39 = vector.load %arg8[%c0_35, %c0_36] : memref<4x256xf32, #tpu.memory_space<vmem>>, vector<4x256xf32>
      %cst_37 = arith.constant dense<0.000000e+00> : vector<4xf32>
      %40 = vector.multi_reduction <add>, %39, %cst_37 [1] : vector<4x256xf32> to vector<4xf32>
      %41 = vector.shape_cast %40 : vector<4xf32> to vector<4x1xf32>
      %c0_38 = arith.constant 0 : index
      %c0_39 = arith.constant 0 : index
      %c0_40 = arith.constant 0 : index
      %c2 = arith.constant 2 : index
      %42 = vector.load %arg5[%c0_38, %c0_39, %c0_40, %c2] : memref<1x1x4x3xf32, #tpu.memory_space<vmem>>, vector<1x1x4x1xf32>
      %43 = vector.shape_cast %42 : vector<1x1x4x1xf32> to vector<4x1xf32>
      %44 = vector.shape_cast %41 : vector<4x1xf32> to vector<1x1x4x1xf32>
      tpu.vector_store %arg5[%c0_38, %c0_39, %c0_40, %c2], %44 {strides = array<i32>} : memref<1x1x4x3xf32, #tpu.memory_space<vmem>>, vector<1x1x4x1xf32>,
    } else {
    }
    return
  }
  func.func @transform_0(%arg0: i32, %arg1: i32, %arg2: i32) -> (i32, i32, i32) {
    %c1_i32 = arith.constant 1 : i32
    %0 = arith.muli %arg0, %c1_i32 : i32
    %1 = arith.addi %0, %arg2 : i32
    %c0_i32 = arith.constant 0 : i32
    %2 = arith.minsi %1, %c0_i32 : i32
    %c0_i32_0 = arith.constant 0 : i32
    %c0_i32_1 = arith.constant 0 : i32
    return %arg1, %c0_i32_0, %2 : i32, i32, i32
  }
  func.func @transform_1(%arg0: i32, %arg1: i32, %arg2: i32) -> (i32, i32, i32) {
    %c1_i32 = arith.constant 1 : i32
    %0 = arith.muli %arg0, %c1_i32 : i32
    %1 = arith.addi %0, %arg2 : i32
    %c0_i32 = arith.constant 0 : i32
    %2 = arith.minsi %1, %c0_i32 : i32
    %c0_i32_0 = arith.constant 0 : i32
    %c0_i32_1 = arith.constant 0 : i32
    return %arg1, %c0_i32_0, %2 : i32, i32, i32
  }
  func.func @transform_2(%arg0: i32, %arg1: i32, %arg2: i32) -> (i32, i32, i32, i32) {
    %c0_i32 = arith.constant 0 : i32
    %c0_i32_0 = arith.constant 0 : i32
    %c0_i32_1 = arith.constant 0 : i32
    return %arg0, %arg1, %c0_i32, %c0_i32_0 : i32, i32, i32, i32
  }
}

</mosaic_0001>

<bundles_post_ra>
// kernel: tpu_custom_call.1
= control target key start
LH: loop header
LB: loop body
LE: loop exit
PB: predicated region body
PF: predicated region fallthrough
CT: control target
= control target key end

     0   :  { %7 = vsyncpa [#allocation6], 0  ;;  %s846_s0 = inlined_call_operand.hbm [shape: f32[2,4,256], index: 0, kind: input, shape index: {}]   ;;  %s847_s1 = inlined_call_operand.hbm [shape: s32[2,1,256], index: 1, kind: input, shape index: {}]   ;;  %s848_s2 = inlined_call_operand.vmem [shape: f32[1,2,4,3], index: 2, kind: output, shape index: {}]  }
   0x1   :  { %9 = vsyncpa [#allocation6 + $0x1], 0 }
   0x2   :  { %10 = vsyncpa [#allocation8], 0 }
   0x3   :  { %12 = vsyncpa [#allocation8 + $0x1], 0  ;;  %s680_s9 = smov 0   ;;  %s682_s10 = smov 0  }
   0x4   :  { %s684_s11 = smov 0   ;;  %s686_s12 = smov 0  }
   0x5   :  { %s688_s13 = smov 0   ;;  %s690_s14 = smov 0  }
   0x6 LB: > { %s464_s15 = sadd.s32 4294967295, %s660_s14   ;;  %s33_s16 = sadd.s32 1, %s656_s13  ;;  %s660_s14 = sphi %s690_s14, %s18_s14   ;;  %s656_s13 = sphi %s688_s13, %s862_s13   ;;  %s652_s12 = sphi %s686_s12, %s861_s12   ;;  %s648_s11 = sphi %s684_s11, %s860_s11   ;;  %s644_s10 = sphi %s682_s10, %s859_s10   ;;  %s640_s9 = sphi %s680_s9, %s858_s9  }
   0x7   : > { %p35_p0 = scmp.ge.s32.totalorder %s33_s16, 2  ;;  %s52_s17 = sadd.s32 1, %s648_s11 }
   0x8   : > { %p59_p1 = scmp.ne.s32.totalorder %s648_s11, %s644_s10  ;;  %p60_p2 = scmp.eq.s32.totalorder %s660_s14, 0 }
   0x9   : > { %s864_s16 = smov (%p35_p0, %s33_s16), 0  ;;  %p65_p4 = scmp.ne.s32.totalorder %s644_s10, %s640_s9 }
   0xa   : > { %p716_p3 = por %p60_p2, %p59_p1  ;;  %s47_s19 = ssub.s32 %s656_s13, %s864_s16 }
   0xb   : > { %p66_p5 = scmp.eq.s32.totalorder %s464_s15, 0  ;;  %p50_p6 = scmp.eq.s32.totalorder %s47_s19, 0 }
   0xc   : > { %p495_p8 = scmp.lt.s32.totalorder %s660_s14, 2  ;;  %s732_s22 = sand.u32 1, %s648_s11  }
   0xd   : > { %p723_p7 = por %p66_p5, %p65_p4  ;;  %s480_s23 = sshll.u32 %s656_s13, 7 }
   0xe   : > { %s729_s21 = scalar_select %p50_p6, %s648_s11, %s52_s17  }
   0xf   : > { %s851_s20 = scalar_select %p723_p7, 1, 0 }
  0x10   : > { %s468_s24 = sshll.u32 %s732_s22, 3  ;;  %s739_s27 = scalar_lea.hbm %s846_s0, %s480_s23 }
  0x11   : > { %s155_s28 = scalar_lea.vmem [#allocation5], %s468_s24  ;;  %p743_p9 = pnand %p495_p8, %p716_p3 }
  0x12   : > { %s168_s29 = sshll.u32 %s155_s28, 4  ;;  %s152_s3 = scalar_lea.sflag [#allocation6], %s732_s22  ;;  %s747_s29 = int_to_ptr.vmem [resolvable:$true] %s168_s29 }
  0x13   : > { %s546_s4 = scalar_lea.hbm %s739_s27, 128  ;;  %p548_p13 = pneg %p743_p9 }
  0x14   : > { %p547_p12 = scmp.ne.s32.totalorder %s739_s27, %s546_s4  ;;  %s551_s7 = scalar_lea.hbm %s846_s0, 256 }
  0x15   : > { %p552_p2 = scmp.lt.u32.totalorder %s739_s27, %s846_s0  ;;  %p553_p3 = scmp.lt.u32.totalorder %s551_s7, %s546_s4 }
  0x16   : > { %p549_p0 = pnand %p548_p13, %p547_p12  ;;  %p555_p5 = scmp.lt.u32.totalorder %s546_s4, %s739_s27 }
  0x17   : > { %p554_p4 = por %p553_p3, %p552_p2 }
  0x18   : > { %p550_p1 = pneg %p549_p0 }
  0x19   : > { %p556_p6 = por %p555_p5, %p554_p4 }
  0x1b   : > { %p557_p8 = pnand %p556_p6, %p550_p1 }
  0x1d   : > { %560 = shalt.err (!%p557_p8)
}
  0x1e   : > { %s561_s15 = scalar_lea.vmem %s747_s29, 128  ;;  %s662_s17 = smov [#allocation5]  }
  0x1f   : > { %p562_p12 = scmp.ne.s32.totalorder %s747_s29, %s561_s15  ;;  %s566_s18 = sshll.u32 %s662_s17, 4  ;;  %s567_s18 = int_to_ptr.vmem [resolvable:$false] %s566_s18 }
  0x20   : > { %s568_s19 = scalar_lea.vmem %s567_s18, 256  ;;  %p569_p11 = scmp.lt.s32.totalorder %s747_s29, %s567_s18 }
  0x21   : > { %p564_p0 = pnand %p562_p12, %p548_p13  ;;  %p570_p2 = scmp.lt.s32.totalorder %s568_s19, %s561_s15 }
  0x23   : > { %p565_p10 = pneg %p564_p0  ;;  %p571_p3 = por %p570_p2, %p569_p11 }
  0x25   : > { %p572_p4 = pnand %p571_p3, %p565_p10 }
  0x27   : > { %575 = shalt.err (!%p572_p4)
}
  0x28   : > { %491 = dma.hbm_to_vmem [thread:$0]  (!%p743_p9), %s739_s27, 128, %s747_s29, %s152_s3  }
  0x29   : > { %p853_p1 = scmp.lt.s32.totalorder %s660_s14, 3  ;;  %p854_p5 = scmp.ge.s32.totalorder %s660_s14, 1 }
  0x2a   : > { %s471_s24 = sshll.u32 %s732_s22, 1  ;;  %s481_s25 = sshll.u32 %s656_s13, 5 }
  0x2b   : > { %p781_p6 = pnand %p854_p5, %p853_p1  ;;  %s790_s4 = scalar_lea.hbm %s847_s1, %s481_s25 }
  0x2c   : > { %s179_s5 = scalar_lea.vmem [#allocation7], %s471_s24  ;;  %s176_s27 = scalar_lea.sflag [#allocation8], %s732_s22 }
  0x2d   : > { %s855_s23 = scalar_select %p781_p6, 1, 0 }
  0x2e   : > { %s192_s6 = sshll.u32 %s179_s5, 4  ;;  %s576_s29 = scalar_lea.hbm %s790_s4, 32  ;;  %s193_s6 = int_to_ptr.vmem [resolvable:$true] %s192_s6 }
  0x2f   : > { %p577_p10 = scmp.ne.s32.totalorder %s790_s4, %s576_s29  ;;  %s581_s8 = scalar_lea.hbm %s847_s1, 64 }
  0x30   : > { %p582_p12 = scmp.lt.u32.totalorder %s790_s4, %s847_s1  ;;  %p583_p0 = scmp.lt.u32.totalorder %s581_s8, %s576_s29 }
  0x31   : > { %p579_p11 = pnand %p577_p10, %p548_p13  ;;  %p585_p3 = scmp.lt.u32.totalorder %s576_s29, %s790_s4 }
  0x32   : > { %p584_p2 = por %p583_p0, %p582_p12 }
  0x33   : > { %p580_p8 = pneg %p579_p11 }
  0x34   : > { %p586_p4 = por %p585_p3, %p584_p2 }
  0x36   : > { %p587_p1 = pnand %p586_p4, %p580_p8 }
  0x38   : > { %590 = shalt.err (!%p587_p1)
}
  0x39   : > { %s591_s22 = scalar_lea.vmem %s193_s6, 32  ;;  %s663_s17 = smov [#allocation7]  }
  0x3a   : > { %p592_p5 = scmp.ne.s32.totalorder %s193_s6, %s591_s22  ;;  %s596_s18 = sshll.u32 %s663_s17, 4  ;;  %s597_s18 = int_to_ptr.vmem [resolvable:$false] %s596_s18 }
  0x3b   : > { %s598_s19 = scalar_lea.vmem %s597_s18, 64  ;;  %p599_p7 = scmp.lt.s32.totalorder %s193_s6, %s597_s18 }
  0x3c   : > { %p594_p10 = pnand %p592_p5, %p548_p13  ;;  %p600_p6 = scmp.lt.s32.totalorder %s598_s19, %s591_s22 }
  0x3e   : > { %p595_p11 = pneg %p594_p10  ;;  %p601_p0 = por %p600_p6, %p599_p7 }
  0x40   : > { %p602_p12 = pnand %p601_p0, %p595_p11 }
  0x42   : > { %605 = shalt.err (!%p602_p12)
}
  0x43   : > { %494 = dma.hbm_to_vmem [thread:$0]  (!%p743_p9), %s790_s4, 32, %s193_s6, %s176_s27  }
  0x44   : > { %p856_p8 = scmp.ne.s32.totalorder %s855_s23, 0 }
  0x45   : > { %s203_s24 = sand.u32 (!%p856_p8), 1, %s644_s10   ;;  %p857_p13 = scmp.ne.s32.totalorder (!%p856_p8), %s851_s20, 0 }
  0x46   : > { %201 = sbr.rel (%p856_p8) target bundleno = 244 (0xf4), region = 28  ;;  %s475_s25 = sshll.u32 (!%p856_p8), %s203_s24, 3 }
  0x47   : > { %s204_s26 = scalar_lea.sflag (!%p856_p8), [#allocation6], %s203_s24  ;;  %s207_s28 = scalar_lea.vmem (!%p856_p8), [#allocation5], %s475_s25 }
  0x4d   : > { %631 = dma.done.wait (%p857_p13), %s204_s26, 128  }
  0x4e   : > { %633 = vsyncadd (%p857_p13), %s204_s26, 4294967168  ;;  %s476_s5 = sshll.u32 %s203_s24, 1  ;;  %s213_s29 = scalar_lea.sflag [#allocation8], %s203_s24 }
  0x4f   : > { %s216_s30 = scalar_lea.vmem [#allocation7], %s476_s5 }
  0x50   : > { %635 = dma.done.wait (%p857_p13), %s213_s29, 32  }
  0x51   : > { %637 = vsyncadd (%p857_p13), %s213_s29, 4294967264  ;;  %v270_v0 = vlaneseq  ;;  %v268_v4 = vld [vmem:[%s207_s28] sm:$0xff]  ;;  %v269_v5 = vld [vmem:[%s216_s30] sm:$0x3]  ;;  %vm313_vm2 = vcmask 1043456   ;;  %v664_v11 = vmov 0.0  }
  0x52   : > { %v284_v8 = vcombine.high %v268_v4, %v268_v4  ;;  %v325_v20 = vsel %vm313_vm2, %v268_v4, 0.0  ;;  %p255_p7 = scmp.lt.s32.totalorder %s652_s12, 1  ;;  %vm319_vm3 = vcmask 3072   ;;  %vm330_vm4 = vcmask 11272  }
  0x53   : > { %v271_v1 = vshrl.u32 %v270_v0, 7  ;;  %vm341_vm5 = vcmask 19472  }
  0x54   : > { %v326_v21 = vsel %vm313_vm2, %v284_v8, 0.0  ;;  %s866_s12 = smov (!%p255_p7, %s652_s12), 1 }
  0x55   : > { %v274_v2 = vsub.s32 0, %v271_v1  ;;  %v278_v3 = vsub.s32 1, %v271_v1  ;;  %v327_v26 = vadd.f32 %v326_v21, %v325_v20  ;;  %s477_s20 = sshll.u32 %s866_s12, 2 }
  0x56   : > { %s260_s6 = scalar_lea.vmem %s848_s2, %s477_s20 }
  0x57   : > { %v275_v6 = vrot.slane %v269_v5, %v274_v2  ;;  %v279_v7 = vrot.slane %v269_v5, %v278_v3 }
  0x59   : > { %vm280_vm0 = vcmp.eq.s32.totalorder %v271_v1, %v275_v6  ;;  %vm281_vm1 = vcmp.eq.s32.totalorder %v271_v1, %v279_v7 }
  0x5a   : > { %v286_v9 = vsel %vm280_vm0, %v268_v4, 0.0  ;;  %v287_v10 = vsel %vm281_vm1, %v284_v8, 0.0  ;;  %v298_v12 = vsel %vm280_vm0, 1.0, %v664_v11  ;;  %v299_v15 = vsel %vm281_vm1, 1.0, %v664_v11 }
  0x5b   : > { %v290_v13 = vcombine.low %v286_v9, %v287_v10  ;;  %v482_v14 = vcombine.low %v287_v10, %v287_v10  ;;  %v302_v16 = vcombine.low %v298_v12, %v299_v15  ;;  %v483_v17 = vcombine.low %v299_v15, %v299_v15 }
  0x5d   : > { %v314_v18 = vsel %vm313_vm2, %v290_v13, 0.0  ;;  %v315_v19 = vsel %vm313_vm2, %v482_v14, 0.0  ;;  %v336_v23 = vsel %vm313_vm2, %v302_v16, 0.0  ;;  %v337_v24 = vsel %vm313_vm2, %v483_v17, 0.0 }
  0x5e   : > { %v316_v22 = vadd.f32 %v315_v19, %v314_v18  ;;  %v338_v25 = vadd.f32 %v337_v24, %v336_v23 }
  0x60   : > { %317 = vadd.xlane.f32.xlu0 %v316_v22  ;;  %339 = vadd.xlane.f32.xlu1 %v338_v25 }
  0x64   : > { %328 = vadd.xlane.f32.xlu0 %v327_v26 }
  0xed   : > { %v318_v27 = vpop.xlane.xlu0 %317  ;;  %v340_v28 = vpop.xlane.xlu1 %339 }
  0xee   : > { %320 = vst.msk [vmem:[%s260_s6] sm:$0xf] %vm319_vm3, %v318_v27 }
  0xf1   : > { %v329_v29 = vpop.xlane.xlu0 %328 }
  0xf2   : > { %331 = vst.msk [vmem:[%s260_s6] sm:$0xf] %vm330_vm4, %v329_v29 }
  0xf3   : > { %342 = vst.msk [vmem:[%s260_s6] sm:$0xf] %vm341_vm5, %v340_v28 }
  0xf4 PF: > { %s18_s14 = sadd.s32 1, %s660_s14   ;;  %s858_s9 = smov %s644_s10 }
  0xf5   : > { %p15_p9 = scmp.ge.s32.totalorder %s18_s14, 4   ;;  %s859_s10 = smov %s648_s11 }
  0xf6   : > { %s860_s11 = smov %s729_s21  ;;  %s861_s12 = smov %s656_s13 }
  0xf7   : > { %s862_s13 = smov %s864_s16  ;;  %17 = sbr.rel (!%p15_p9) target bundleno = 6 (0x6), region = 89 }
  0xfe   :  { %370 = vsyncpa [#allocation6], 1 }
  0xff   :  { %372 = vsyncpa [#allocation6 + $0x1], 1 }
 0x100   :  { %373 = vsyncpa [#allocation8], 1 }
 0x101   :  { %375 = vsyncpa [#allocation8 + $0x1], 1 }

</bundles_post_ra>
